<compile_context>
chip_gen: v5e
topology: v5e:2x2
jax: 0.10.0
libtpu: 0.0.40
codegen_flags: <defaults>
</compile_context>

<pallas_src>
from functools import partial

import jax
import jax.numpy as jnp
from jax.experimental import pallas as pl
from jax.experimental.pallas import tpu as pltpu


# --------------------------------------------------------------------------- #
# Kernels
# --------------------------------------------------------------------------- #
def se_block_kernel(x_ref, w1_ref, b1_ref, w2_ref, b2_ref, alpha_ref, o_ref):
    """Fused squeeze + excitation + scale for one (Bt, C, HW) batch tile."""
    x = x_ref[...]                       # io dtype; never upcast the whole tile
    bt, c, hw = x.shape

    # Squeeze: global average pool as an MXU matmul against a ones vector in
    # the io dtype (bf16 feeds the MXU natively; accumulation is f32).
    ones = jnp.ones((hw, 1), x.dtype)
    pooled = jnp.dot(x.reshape(bt * c, hw), ones,
                     preferred_element_type=jnp.float32)            # (Bt*C, 1)
    pooled = pooled.reshape(bt, c) * (1.0 / hw)                      # (Bt, C)

    # Excitation MLP (tiny, f32): Linear -> PReLU -> Linear -> Sigmoid.
    y1 = jnp.dot(pooled, w1_ref[...],
                 preferred_element_type=jnp.float32) + b1_ref[...]   # (Bt, Cr)
    alpha = alpha_ref[0]                                              # SMEM scalar
    y1 = jnp.where(y1 > 0, y1, alpha * y1)
    y2 = jnp.dot(y1, w2_ref[...],
                 preferred_element_type=jnp.float32) + b2_ref[...]   # (Bt, C)
    gate = jax.nn.sigmoid(y2)                                         # (Bt, C) f32

    # Scale: cast the *tiny* gate to the io dtype before broadcasting over HW,
    # so no block-sized f32 buffer is ever materialized (gate in (0,1), so the
    # bf16 rounding when x is bf16 is benign).
    o_ref[...] = x * gate.astype(x.dtype)[:, :, None]


def se_pool_kernel(x_ref, pooled_ref, acc_ref, *, inv_hw):
    """HW-split pass 1: accumulate the global-average pool over the HW
    ("arbitrary") grid axis; finalize into the resident (Bt, C, 1) out block."""
    h = pl.program_id(1)

    @pl.when(h == 0)
    def _():
        acc_ref[...] = jnp.zeros_like(acc_ref)

    x = x_ref[...]
    bt, c, hwt = x.shape
    ones = jnp.ones((hwt, 1), x.dtype)
    acc_ref[...] += jnp.dot(x.reshape(bt * c, hwt), ones,
                            preferred_element_type=jnp.float32).reshape(bt, c, 1)

    @pl.when(h == pl.num_programs(1) - 1)
    def _():
        pooled_ref[...] = acc_ref[...] * inv_hw


def se_scale_kernel(pooled_ref, w1_ref, b1_ref, w2_ref, b2_ref, alpha_ref,
                    x_ref, o_ref, gate_ref):
    """HW-split pass 2: compute the sigmoid gate once per batch tile (cached in
    VMEM scratch at h == 0), then rescale the current (Bt, C, HWt) tile."""
    h = pl.program_id(1)

    @pl.when(h == 0)
    def _():
        bt, c, _ = pooled_ref.shape
        pooled = pooled_ref[...].reshape(bt, c)                       # (Bt, C) f32
        y1 = jnp.dot(pooled, w1_ref[...],
                     preferred_element_type=jnp.float32) + b1_ref[...]
        alpha = alpha_ref[0]
        y1 = jnp.where(y1 > 0, y1, alpha * y1)
        y2 = jnp.dot(y1, w2_ref[...],
                     preferred_element_type=jnp.float32) + b2_ref[...]
        gate_ref[...] = jax.nn.sigmoid(y2)

    x = x_ref[...]
    o_ref[...] = x * gate_ref[...].astype(x.dtype)[:, :, None]


# --------------------------------------------------------------------------- #
# Tiling helpers
# --------------------------------------------------------------------------- #
def _vmem_budget():
    """(max_block_bytes, vmem_limit_bytes) sized for this chip generation."""
    cap = 64 * 1024 * 1024                 # assume smallest (v7x) if query fails
    try:
        cap = int(getattr(pltpu.get_tpu_info(), "vmem_capacity_bytes", cap))
    except Exception:
        pass
    if cap >= 128 * 1024 * 1024:           # v5e / v6e: VMEM is plentiful
        return 8 * 1024 * 1024, 96 * 1024 * 1024
    return 6 * 1024 * 1024, 40 * 1024 * 1024   # v7x: 64 MiB physical


def _choose_batch_tile(B, per_batch_bytes, max_block_bytes,
                       min_split_bytes=1 * 1024 * 1024):
    """Largest Bt whose block fits the budget; keep >= 2 grid steps (so the
    'parallel' axis can shard across v7x's 2 TensorCores) whenever the halved
    block stays >= ~1 MiB so the ~0.35 us/step overhead remains negligible."""
    bt = max(1, min(B, max_block_bytes // max(per_batch_bytes, 1)))
    if bt >= B and B >= 2:
        half = pl.cdiv(B, 2)
        if half * per_batch_bytes >= min_split_bytes:
            bt = half
    return bt


def _choose_hw_tile(C, HW, itemsize, max_block_bytes):
    """Largest multiple-of-128 divisor of HW whose (C, HWt) slab fits the block
    budget (requires HW % 128 == 0); falls back to 128 lanes for huge C."""
    n128 = HW // 128
    for k in range(n128, 0, -1):
        if n128 % k == 0 and C * k * 128 * itemsize <= max_block_bytes:
            return k * 128
    return 128


# --------------------------------------------------------------------------- #
# Wrapper
# --------------------------------------------------------------------------- #
def se_block_pallas(x_nchw, w1, b1, alpha, w2, b2, *, max_block_bytes=None):
    """SEBlock forward.  x_nchw: (B, C, H, W); weights in PyTorch nn.Linear
    layout (out_features, in_features), pre-transposed here.  I/O stays in the
    caller's dtype (use bf16 inputs to halve HBM traffic on this mem-bound op);
    pooling / MLP math is f32."""
    B, C, H, W = x_nchw.shape
    HW = H * W
    Cr = w1.shape[0]
    io_dtype = x_nchw.dtype
    itemsize = jnp.dtype(io_dtype).itemsize

    x = x_nchw.reshape(B, C, HW)
    w1_t = jnp.asarray(w1, jnp.float32).T              # (C, Cr)
    w2_t = jnp.asarray(w2, jnp.float32).T              # (Cr, C)
    b1_r = jnp.asarray(b1, jnp.float32).reshape(1, Cr)
    b2_r = jnp.asarray(b2, jnp.float32).reshape(1, C)
    alpha_s = jnp.asarray(alpha, jnp.float32).reshape(1)   # SMEM scalar

    default_block_bytes, vmem_limit = _vmem_budget()
    if max_block_bytes is None:
        max_block_bytes = default_block_bytes

    per_batch = C * HW * itemsize
    param_bytes = (2 * C * Cr + C + Cr) * 4
    hw_split = (per_batch > max_block_bytes) and (HW % 128 == 0) and (HW > 128)

    if not hw_split:
        # ---- Fused single-kernel path: whole (C, HW) slab per example. ----
        # TODO(synk): when HW is not a multiple of 128 (e.g. 7x7=49) the output
        # stores are masked (vst.msk); fold/pad to a lane-dense last dim if
        # such shapes become hot.
        Bt = _choose_batch_tile(B, per_batch, max_block_bytes)
        grid = (pl.cdiv(B, Bt),)
        cost = pl.CostEstimate(
            flops=3 * B * C * HW + 4 * B * C * Cr,
            transcendentals=B * C,
            bytes_accessed=2 * B * C * HW * itemsize + param_bytes,
        )
        out = pl.pallas_call(
            se_block_kernel,
            out_shape=jax.ShapeDtypeStruct((B, C, HW), io_dtype),
            grid_spec=pltpu.PrefetchScalarGridSpec(
                num_scalar_prefetch=0,
                grid=grid,
                in_specs=[
                    pl.BlockSpec((Bt, C, HW), lambda b: (b, 0, 0)),    # x tile
                    # Constant block index -> Pallas elides weight re-fetch.
                    pl.BlockSpec((C, Cr), lambda b: (0, 0)),           # w1^T
                    pl.BlockSpec((1, Cr), lambda b: (0, 0)),           # b1
                    pl.BlockSpec((Cr, C), lambda b: (0, 0)),           # w2^T
                    pl.BlockSpec((1, C), lambda b: (0, 0)),            # b2
                    pl.BlockSpec(memory_space=pltpu.MemorySpace.SMEM), # slope
                ],
                out_specs=pl.BlockSpec((Bt, C, HW), lambda b: (b, 0, 0)),
            ),
            compiler_params=pltpu.CompilerParams(
                dimension_semantics=("parallel",),
                vmem_limit_bytes=vmem_limit,
            ),
            cost_estimate=cost,
        )(x, w1_t, b1_r, w2_t, b2_r, alpha_s)
        return out.reshape(B, C, H, W)

    # ---- Large-feature-map path: one example's slab exceeds the budget. ----
    HWt = _choose_hw_tile(C, HW, itemsize, max_block_bytes)
    block_bytes = C * HWt * itemsize
    Bt = max(1, min(B, max_block_bytes // max(block_bytes, 1)))
    grid = (pl.cdiv(B, Bt), HW // HWt)        # HWt divides HW by construction

    # Pass 1: global-average pool accumulated over the HW ("arbitrary") axis.
    pooled = pl.pallas_call(
        partial(se_pool_kernel, inv_hw=1.0 / HW),
        out_shape=jax.ShapeDtypeStruct((B, C, 1), jnp.float32),
        grid_spec=pltpu.PrefetchScalarGridSpec(
            num_scalar_prefetch=0,
            grid=grid,
            in_specs=[pl.BlockSpec((Bt, C, HWt), lambda b, h: (b, 0, h))],
            out_specs=pl.BlockSpec((Bt, C, 1), lambda b, h: (b, 0, 0)),
            scratch_shapes=[pltpu.VMEM((Bt, C, 1), jnp.float32)],
        ),
        compiler_params=pltpu.CompilerParams(
            dimension_semantics=("parallel", "arbitrary"),
            vmem_limit_bytes=vmem_limit,
        ),
        cost_estimate=pl.CostEstimate(
            flops=2 * B * C * HW, transcendentals=0,
            bytes_accessed=B * C * HW * itemsize + B * C * 4),
    )(x)

    # Pass 2: excitation MLP (once per batch tile, cached in VMEM scratch) and
    # channel-wise rescale of each HW tile.  The HW axis must stay "arbitrary"
    # (sequential) so h == 0 initializes the gate scratch before it is reused.
    out = pl.pallas_call(
        se_scale_kernel,
        out_shape=jax.ShapeDtypeStruct((B, C, HW), io_dtype),
        grid_spec=pltpu.PrefetchScalarGridSpec(
            num_scalar_prefetch=0,
            grid=grid,
            in_specs=[
                pl.BlockSpec((Bt, C, 1), lambda b, h: (b, 0, 0)),      # pooled
                pl.BlockSpec((C, Cr), lambda b, h: (0, 0)),            # w1^T
                pl.BlockSpec((1, Cr), lambda b, h: (0, 0)),            # b1
                pl.BlockSpec((Cr, C), lambda b, h: (0, 0)),            # w2^T
                pl.BlockSpec((1, C), lambda b, h: (0, 0)),             # b2
                pl.BlockSpec(memory_space=pltpu.MemorySpace.SMEM),     # slope
                pl.BlockSpec((Bt, C, HWt), lambda b, h: (b, 0, h)),    # x tile
            ],
            out_specs=pl.BlockSpec((Bt, C, HWt), lambda b, h: (b, 0, h)),
            scratch_shapes=[pltpu.VMEM((Bt, C), jnp.float32)],         # gate
        ),
        compiler_params=pltpu.CompilerParams(
            dimension_semantics=("parallel", "arbitrary"),
            vmem_limit_bytes=vmem_limit,
        ),
        cost_estimate=pl.CostEstimate(
            flops=B * C * HW + 4 * B * C * Cr, transcendentals=B * C,
            bytes_accessed=2 * B * C * HW * itemsize + B * C * 4 + param_bytes),
    )(pooled, w1_t, b1_r, w2_t, b2_r, alpha_s, x)

    return out.reshape(B, C, H, W)


# --------------------------------------------------------------------------- #
# Reference + test
# --------------------------------------------------------------------------- #
def se_block_reference(x_nchw, w1, b1, alpha, w2, b2):
    """Pure-JAX reference matching the PyTorch forward."""
    y = jnp.mean(x_nchw.astype(jnp.float32), axis=(2, 3))        # (B, C)
    y = y @ w1.T + b1                                            # (B, Cr)
    y = jnp.where(y > 0, y, alpha.reshape(()) * y)               # PReLU (shared)
    y = y @ w2.T + b2                                            # (B, C)
    y = jax.nn.sigmoid(y)
    return (x_nchw.astype(jnp.float32) * y[:, :, None, None]).astype(x_nchw.dtype)


def _make_params(key, C, reduction):
    Cr = C // reduction
    k1, kb1, k2, kb2 = jax.random.split(key, 4)
    bound1 = 1.0 / (C ** 0.5)
    w1 = jax.random.uniform(k1, (Cr, C), jnp.float32, -bound1, bound1)
    b1 = jax.random.uniform(kb1, (Cr,), jnp.float32, -bound1, bound1)
    bound2 = 1.0 / (Cr ** 0.5)
    w2 = jax.random.uniform(k2, (C, Cr), jnp.float32, -bound2, bound2)
    b2 = jax.random.uniform(kb2, (C,), jnp.float32, -bound2, bound2)
    alpha = jnp.array([0.25], dtype=jnp.float32)      # nn.PReLU() default init
    return w1, b1, alpha, w2, b2


if __name__ == "__main__":
    key = jax.random.PRNGKey(0)

    # Test 1: fused single-kernel path (SEBlock(channel=64, reduction=16)).
    B, C, H, W = 2, 64, 16, 16
    kx, kp, key = jax.random.split(key, 3)
    x = jax.random.normal(kx, (B, C, H, W), dtype=jnp.float32)
    params = _make_params(kp, C, 16)
    out = jax.block_until_ready(se_block_pallas(x, *params))
    ref = se_block_reference(x, *params)
    assert out.shape == (B, C, H, W)
    assert jnp.allclose(out, ref, rtol=1e-5, atol=1e-5), "fused path mismatch"

    # Test 2: large-feature-map (HW-split) path, exercised at small shapes by
    # forcing a tiny block budget so per-example slabs exceed it.
    B2, C2, H2, W2 = 2, 64, 32, 32
    kx2, kp2, key = jax.random.split(key, 3)
    x2 = jax.random.normal(kx2, (B2, C2, H2, W2), dtype=jnp.float32)
    params2 = _make_params(kp2, C2, 16)
    out2 = jax.block_until_ready(
        se_block_pallas(x2, *params2, max_block_bytes=64 * 1024))
    ref2 = se_block_reference(x2, *params2)
    assert out2.shape == (B2, C2, H2, W2)
    assert jnp.allclose(out2, ref2, rtol=1e-5, atol=1e-5), "HW-split path mismatch"

    print("KERNEL_OK")
</pallas_src>

<mosaic_0001>
module attributes {stable_mosaic.version = 11 : i64} {
  func.func @se_block_kernel(%arg0: i32, %arg1: memref<2x64x256xf32, #tpu.memory_space<vmem>>, %arg2: memref<64x4xf32, #tpu.memory_space<vmem>>, %arg3: memref<1x4xf32, #tpu.memory_space<vmem>>, %arg4: memref<4x64xf32, #tpu.memory_space<vmem>>, %arg5: memref<1x64xf32, #tpu.memory_space<vmem>>, %arg6: memref<1xf32, #tpu.memory_space<smem>>, %arg7: memref<2x64x256xf32, #tpu.memory_space<vmem>>) attributes {dimension_semantics = [#tpu.dimension_semantics<parallel>], iteration_bounds = array<i64: 1>, scalar_prefetch = 0 : i64, scratch_operands = 0 : i64, tpu.core_type = #tpu.core_type<tc>, window_params = [{transform_indices = @transform_0, window_bounds = array<i64: 2, 64, 256>}, {pipeline_mode = #tpu.pipeline_mode<synchronous>, transform_indices = @transform_1, window_bounds = array<i64: 64, 4>}, {pipeline_mode = #tpu.pipeline_mode<synchronous>, transform_indices = @transform_2, window_bounds = array<i64: 1, 4>}, {pipeline_mode = #tpu.pipeline_mode<synchronous>, transform_indices = @transform_3, window_bounds = array<i64: 4, 64>}, {pipeline_mode = #tpu.pipeline_mode<synchronous>, transform_indices = @transform_4, window_bounds = array<i64: 1, 64>}, {transform_indices = @transform_5, window_bounds = array<i64: 1>}, {transform_indices = @transform_6, window_bounds = array<i64: 2, 64, 256>}]} {
    %c0 = arith.constant 0 : index
    %c0_0 = arith.constant 0 : index
    %c0_1 = arith.constant 0 : index
    %0 = vector.load %arg1[%c0, %c0_0, %c0_1] : memref<2x64x256xf32, #tpu.memory_space<vmem>>, vector<2x64x256xf32>
    %cst = arith.constant 1.000000e+00 : f32
    %1 = vector.broadcast %cst : f32 to vector<256x1xf32>
    %2 = vector.shape_cast %0 : vector<2x64x256xf32> to vector<128x256xf32>
    %cst_2 = arith.constant dense<0.000000e+00> : vector<128x1xf32>
    %3 = tpu.matmul %2, %1, %cst_2 {dimension_numbers = #tpu.dot_dimension_numbers<[1], [0], [0], [1], [0, 0, 1, 1], [], []>} : vector<128x256xf32>, vector<256x1xf32>, vector<128x1xf32> -> vector<128x1xf32>
    %4 = vector.shape_cast %3 : vector<128x1xf32> to vector<2x64xf32>
    %cst_3 = arith.constant 3.906250e-03 : f32
    %5 = vector.broadcast %cst_3 : f32 to vector<2x64xf32>
    %6 = arith.mulf %4, %5 : vector<2x64xf32>
    %c0_4 = arith.constant 0 : index
    %c0_5 = arith.constant 0 : index
    %7 = vector.load %arg2[%c0_4, %c0_5] : memref<64x4xf32, #tpu.memory_space<vmem>>, vector<64x4xf32>
    %cst_6 = arith.constant dense<0.000000e+00> : vector<2x4xf32>
    %8 = tpu.matmul %6, %7, %cst_6 {dimension_numbers = #tpu.dot_dimension_numbers<[1], [0], [0], [1], [0, 0, 1, 1], [], []>} : vector<2x64xf32>, vector<64x4xf32>, vector<2x4xf32> -> vector<2x4xf32>
    %c0_7 = arith.constant 0 : index
    %c0_8 = arith.constant 0 : index
    %9 = vector.load %arg3[%c0_7, %c0_8] : memref<1x4xf32, #tpu.memory_space<vmem>>, vector<1x4xf32>
    %10 = vector.broadcast %9 : vector<1x4xf32> to vector<2x4xf32>
    %11 = arith.addf %8, %10 : vector<2x4xf32>
    %c0_9 = arith.constant 0 : index
    %12 = memref.load %arg6[%c0_9] : memref<1xf32, #tpu.memory_space<smem>>
    %cst_10 = arith.constant 0.000000e+00 : f32
    %13 = vector.broadcast %cst_10 : f32 to vector<2x4xf32>
    %14 = arith.cmpf ogt, %11, %13 : vector<2x4xf32>
    %15 = vector.broadcast %12 : f32 to vector<2x4xf32>
    %16 = arith.mulf %15, %11 : vector<2x4xf32>
    %17 = arith.select %14, %11, %16 : vector<2x4xi1>, vector<2x4xf32>
    %c0_11 = arith.constant 0 : index
    %c0_12 = arith.constant 0 : index
    %18 = vector.load %arg4[%c0_11, %c0_12] : memref<4x64xf32, #tpu.memory_space<vmem>>, vector<4x64xf32>
    %cst_13 = arith.constant dense<0.000000e+00> : vector<2x64xf32>
    %19 = tpu.matmul %17, %18, %cst_13 {dimension_numbers = #tpu.dot_dimension_numbers<[1], [0], [0], [1], [0, 0, 1, 1], [], []>} : vector<2x4xf32>, vector<4x64xf32>, vector<2x64xf32> -> vector<2x64xf32>
    %c0_14 = arith.constant 0 : index
    %c0_15 = arith.constant 0 : index
    %20 = vector.load %arg5[%c0_14, %c0_15] : memref<1x64xf32, #tpu.memory_space<vmem>>, vector<1x64xf32>
    %21 = vector.broadcast %20 : vector<1x64xf32> to vector<2x64xf32>
    %22 = arith.addf %19, %21 : vector<2x64xf32>
    %23 = arith.negf %22 : vector<2x64xf32>
    %24 = math.exp %23 : vector<2x64xf32>
    %cst_16 = arith.constant 1.000000e+00 : f32
    %25 = vector.broadcast %cst_16 : f32 to vector<2x64xf32>
    %26 = arith.addf %25, %24 : vector<2x64xf32>
    %27 = arith.divf %25, %26 : vector<2x64xf32>
    %28 = vector.shape_cast %27 : vector<2x64xf32> to vector<2x64x1xf32>
    %29 = vector.broadcast %28 : vector<2x64x1xf32> to vector<2x64x256xf32>
    %30 = arith.mulf %0, %29 : vector<2x64x256xf32>
    %c0_17 = arith.constant 0 : index
    %c0_18 = arith.constant 0 : index
    %c0_19 = arith.constant 0 : index
    %31 = vector.load %arg7[%c0_17, %c0_18, %c0_19] : memref<2x64x256xf32, #tpu.memory_space<vmem>>, vector<2x64x256xf32>
    tpu.vector_store %arg7[%c0_17, %c0_18, %c0_19], %30 {strides = array<i32>} : memref<2x64x256xf32, #tpu.memory_space<vmem>>, vector<2x64x256xf32>,
    return
  }
  func.func @transform_0(%arg0: i32) -> (i32, i32, i32) {
    %c0_i32 = arith.constant 0 : i32
    %c0_i32_0 = arith.constant 0 : i32
    %c0_i32_1 = arith.constant 0 : i32
    return %arg0, %c0_i32, %c0_i32_0 : i32, i32, i32
  }
  func.func @transform_1(%arg0: i32) -> (i32, i32) {
    %c0_i32 = arith.constant 0 : i32
    %c0_i32_0 = arith.constant 0 : i32
    %c0_i32_1 = arith.constant 0 : i32
    return %c0_i32, %c0_i32_0 : i32, i32
  }
  func.func @transform_2(%arg0: i32) -> (i32, i32) {
    %c0_i32 = arith.constant 0 : i32
    %c0_i32_0 = arith.constant 0 : i32
    %c0_i32_1 = arith.constant 0 : i32
    return %c0_i32, %c0_i32_0 : i32, i32
  }
  func.func @transform_3(%arg0: i32) -> (i32, i32) {
    %c0_i32 = arith.constant 0 : i32
    %c0_i32_0 = arith.constant 0 : i32
    %c0_i32_1 = arith.constant 0 : i32
    return %c0_i32, %c0_i32_0 : i32, i32
  }
  func.func @transform_4(%arg0: i32) -> (i32, i32) {
    %c0_i32 = arith.constant 0 : i32
    %c0_i32_0 = arith.constant 0 : i32
    %c0_i32_1 = arith.constant 0 : i32
    return %c0_i32, %c0_i32_0 : i32, i32
  }
  func.func @transform_5(%arg0: i32) -> i32 {
    %c0_i32 = arith.constant 0 : i32
    %c0_i32_0 = arith.constant 0 : i32
    return %c0_i32 : i32
  }
  func.func @transform_6(%arg0: i32) -> (i32, i32, i32) {
    %c0_i32 = arith.constant 0 : i32
    %c0_i32_0 = arith.constant 0 : i32
    %c0_i32_1 = arith.constant 0 : i32
    return %arg0, %c0_i32, %c0_i32_0 : i32, i32, i32
  }
}

</mosaic_0001>

<bundles_post_ra>
// kernel: tpu_custom_call.1
= control target key start
LH: loop header
LB: loop body
LE: loop exit
PB: predicated region body
PF: predicated region fallthrough
CT: control target
= control target key end

     0   :  { %12 = vsyncpa [#allocation4], 0  ;;  %s1018_s0 = inlined_call_operand.hbm [shape: f32[2,64,256], index: 0, kind: input, shape index: {}]   ;;  %s1019_s1 = inlined_call_operand.vmem [shape: f32[64,4], index: 1, kind: input, shape index: {}]   ;;  %s1020_s2 = inlined_call_operand.vmem [shape: f32[1,4], index: 2, kind: input, shape index: {}]   ;;  %s1021_s3 = inlined_call_operand.vmem [shape: f32[4,64], index: 3, kind: input, shape index: {}]   ;;  %s1022_s4 = inlined_call_operand.vmem [shape: f32[1,64], index: 4, kind: input, shape index: {}]   ;;  %s1023_s5 = inlined_call_operand.<no memory space> [shape: f32[1], index: 5, kind: input, shape index: {}]   ;;  %s1024_s6 = inlined_call_operand.hbm [shape: f32[2,64,256], index: 6, kind: output, shape index: {}]  }
   0x1   :  { %13 = vsyncpa [#allocation5], 0  ;;  %s18_s23 = sshll.u32 %s1018_s0, 4  ;;  %s724_s24 = smov [#allocation3]   ;;  %s19_s23 = int_to_ptr.hbm [resolvable:$true] %s18_s23 }
   0x2   :  { %s20_s25 = sshll.u32 %s724_s24, 4  ;;  %s725_s26 = smov 256   ;;  %s21_s25 = int_to_ptr.vmem [resolvable:$true] %s20_s25 }
   0x3   :  { %s726_s27 = smov 16  }
   0x4   :  { %26 = dma.hbm_to_vmem [thread:$0]  %s19_s23, 4096, %s21_s25, [#allocation4], %s725_s26, %s725_s26, %s726_s27  }
   0x5   :  { %720 = dma.done.wait [#allocation4], 4096  }
   0x6   :  { %721 = vsyncadd [#allocation4], 4294963200  ;;  %v727_v0 = vmov 1.0   ;;  %v829_v1 = vld [vmem:[#allocation3] sm:$0xff]  ;;  %v834_v3 = vld [vmem:[#allocation3 + $0x8] sm:$0xff]  ;;  %v728_v33 = vmov 0  }
   0x7   :  { %73 = vmatpush.msra.mxu0 %v727_v0  ;;  %608 = vmatpush.msra.mxu3 %v727_v0  ;;  %v832_v2 = vld [vmem:[#allocation3 + $0x80] sm:$0xff]  ;;  %v841_v4 = vld [vmem:[#allocation3 + $0x98] sm:$0xff]  ;;  %v847_v5 = vld [vmem:[#allocation3 + $0x10] sm:$0xff]  ;;  %vm380_vm0 = vcmask 1043456   ;;  %vm300_vm1 = vcmask 130112   ;;  %vm304_vm2 = vcmask 195712  }
   0x8   :  { %138 = vmatpush.msra.mxu1 %v727_v0  ;;  %624 = vmatpush.msra.mxu2 %v727_v0  ;;  %v849_v6 = vld [vmem:[#allocation3 + $0x90] sm:$0xff]  ;;  %v851_v7 = vld [vmem:[#allocation3 + $0x18] sm:$0xff]  ;;  %v854_v8 = vld [vmem:[#allocation3 + $0xa8] sm:$0xff]  ;;  %vm308_vm3 = vcmask 261312   ;;  %vm312_vm4 = vcmask 326912   ;;  %vm316_vm5 = vcmask 392512  }
   0x9   :  { %74 = vmatpush.msra.mxu0 %v727_v0  ;;  %609 = vmatpush.msra.mxu3 %v727_v0  ;;  %v859_v9 = vld [vmem:[#allocation3 + $0x20] sm:$0xff]  ;;  %v863_v11 = vld [vmem:[#allocation3 + $0x28] sm:$0xff]  ;;  %v866_v12 = vld [vmem:[#allocation3 + $0xb8] sm:$0xff]  ;;  %vm320_vm6 = vcmask 458112   ;;  %vm324_vm7 = vcmask 523712   ;;  %vm341_vm8 = vcmask 1041409  }
   0xa   :  { %139 = vmatpush.msra.mxu1 %v727_v0  ;;  %625 = vmatpush.msra.mxu2 %v727_v0  ;;  %v861_v10 = vld [vmem:[#allocation3 + $0xa0] sm:$0xff]  ;;  %v871_v13 = vld [vmem:[#allocation3 + $0x30] sm:$0xff]  ;;  %v875_v15 = vld [vmem:[#allocation3 + $0x38] sm:$0xff]  ;;  %vm343_vm9 = vcmask 523264   ;;  %vm376_vm11 = vcmask 31744   ;;  %s591_s0 = sshll.u32 %s1024_s6, 4  ;;  %s592_s0 = int_to_ptr.hbm [resolvable:$true] %s591_s0 }
   0xb   :  { %75 = vmatpush.msra.mxu0 %v727_v0  ;;  %610 = vmatpush.msra.mxu3 %v727_v0  ;;  %v873_v14 = vld [vmem:[#allocation3 + $0xb0] sm:$0xff]  ;;  %v878_v16 = vld [vmem:[#allocation3 + $0xc8] sm:$0xff]  ;;  %v883_v17 = vld [vmem:[#allocation3 + $0x40] sm:$0xff] }
   0xc   :  { %140 = vmatpush.msra.mxu1 %v727_v0  ;;  %626 = vmatpush.msra.mxu2 %v727_v0  ;;  %v885_v18 = vld [vmem:[#allocation3 + $0xc0] sm:$0xff]  ;;  %v887_v19 = vld [vmem:[#allocation3 + $0x48] sm:$0xff]  ;;  %v890_v20 = vld [vmem:[#allocation3 + $0xd8] sm:$0xff] }
   0xd   :  { %76 = vmatpush.msra.mxu0 %v727_v0  ;;  %611 = vmatpush.msra.mxu3 %v727_v0  ;;  %v895_v21 = vld [vmem:[#allocation3 + $0x50] sm:$0xff]  ;;  %v899_v23 = vld [vmem:[#allocation3 + $0x58] sm:$0xff]  ;;  %v902_v24 = vld [vmem:[#allocation3 + $0xe8] sm:$0xff] }
   0xe   :  { %141 = vmatpush.msra.mxu1 %v727_v0  ;;  %627 = vmatpush.msra.mxu2 %v727_v0  ;;  %v897_v22 = vld [vmem:[#allocation3 + $0xd0] sm:$0xff]  ;;  %v907_v25 = vld [vmem:[#allocation3 + $0x60] sm:$0xff]  ;;  %v911_v27 = vld [vmem:[#allocation3 + $0x68] sm:$0xff] }
   0xf   :  { %77 = vmatpush.msra.mxu0 %v727_v0  ;;  %612 = vmatpush.msra.mxu3 %v727_v0  ;;  %v909_v26 = vld [vmem:[#allocation3 + $0xe0] sm:$0xff]  ;;  %v914_v28 = vld [vmem:[#allocation3 + $0xf8] sm:$0xff]  ;;  %v919_v29 = vld [vmem:[#allocation3 + $0x70] sm:$0xff] }
  0x10   :  { %142 = vmatpush.msra.mxu1 %v727_v0  ;;  %628 = vmatpush.msra.mxu2 %v727_v0  ;;  %v921_v30 = vld [vmem:[#allocation3 + $0xf0] sm:$0xff]  ;;  %v923_v31 = vld [vmem:[#allocation3 + $0x78] sm:$0xff]  ;;  %v928_v32 = vld [vmem:[#allocation3 + $0x88] sm:$0xff] }
  0x11   :  { %78 = vmatpush.msra.mxu0 %v727_v0  ;;  %613 = vmatpush.msra.mxu3 %v727_v0 }
  0x12   :  { %143 = vmatpush.msra.mxu1 %v727_v0  ;;  %629 = vmatpush.msra.mxu2 %v727_v0 }
  0x13   :  { %79 = vmatpush.msra.mxu0 %v727_v0  ;;  %614 = vmatpush.msra.mxu3 %v727_v0 }
  0x14   :  { %144 = vmatpush.msra.mxu1 %v727_v0  ;;  %630 = vmatpush.msra.mxu2 %v727_v0 }
  0x15   :  { %80 = vmatpush.msra.mxu0 %v727_v0  ;;  %615 = vmatpush.msra.mxu3 %v727_v0 }
  0x16   :  { %145 = vmatpush.msra.mxu1 %v727_v0  ;;  %631 = vmatpush.msra.mxu2 %v727_v0 }
  0x17   :  { %81 = vmatpush.msra.mxu0 %v727_v0  ;;  %616 = vmatpush.msra.mxu3 %v727_v0 }
  0x18   :  { %146 = vmatpush.msra.mxu1 %v727_v0  ;;  %632 = vmatpush.msra.mxu2 %v727_v0 }
  0x19   :  { %82 = vmatpush.msra.mxu0 %v727_v0  ;;  %617 = vmatpush.msra.mxu3 %v727_v0 }
  0x1a   :  { %147 = vmatpush.msra.mxu1 %v727_v0  ;;  %633 = vmatpush.msra.mxu2 %v727_v0 }
  0x1b   :  { %83 = vmatpush.msra.mxu0 %v727_v0  ;;  %618 = vmatpush.msra.mxu3 %v727_v0 }
  0x1c   :  { %148 = vmatpush.msra.mxu1 %v727_v0  ;;  %634 = vmatpush.msra.mxu2 %v727_v0 }
  0x1d   :  { %84 = vmatpush.msra.mxu0 %v727_v0  ;;  %619 = vmatpush.msra.mxu3 %v727_v0 }
  0x1e   :  { %149 = vmatpush.msra.mxu1 %v727_v0  ;;  %635 = vmatpush.msra.mxu2 %v727_v0 }
  0x1f   :  { %85 = vmatpush.msra.mxu0 %v727_v0  ;;  %620 = vmatpush.msra.mxu3 %v727_v0 }
  0x20   :  { %150 = vmatpush.msra.mxu1 %v727_v0  ;;  %636 = vmatpush.msra.mxu2 %v727_v0 }
  0x21   :  { %86 = vmatpush.msra.mxu0 %v727_v0  ;;  %621 = vmatpush.msra.mxu3 %v727_v0 }
  0x22   :  { %151 = vmatpush.msra.mxu1 %v727_v0  ;;  %637 = vmatpush.msra.mxu2 %v727_v0 }
  0x23   :  { %87 = vmatpush.msra.mxu0 %v727_v0  ;;  %622 = vmatpush.msra.mxu3 %v727_v0 }
  0x24   :  { %152 = vmatpush.msra.mxu1 %v727_v0  ;;  %638 = vmatpush.msra.mxu2 %v727_v0 }
  0x25   :  { %88 = vmatpush.msra.mxu0 %v727_v0  ;;  %623 = vmatpush.msra.mxu3 %v727_v0 }
  0x26   :  { %153 = vmatpush.msra.mxu1 %v727_v0  ;;  %89 = vmatmul.f32.vlgmr.msra.gmra.mxu0 %v829_v1 }
  0x27   :  { %113 = vmatmul.f32.vlgmr.msra.gmra.mxu3 %v832_v2  ;;  %154 = vmatmul.f32.vlgmr.msra.gmra.mxu1 %v834_v3 }
  0x28   :  { %639 = vmatpush.msra.mxu2 %v727_v0  ;;  %646 = vset.pattern.permute.xlu0 %v728_v33 }
  0x29   :  { %181 = vmatmul.f32.vlgmr.msra.gmra.mxu2 %v841_v4  ;;  %648 = vset.pattern.permute.xlu2 %v728_v33 }
  0x2a   :  { %647 = vset.pattern.permute.xlu1 %v728_v33 }
  0x2e   :  { %92 = vmatmul.f32.gmra.mxu0 %v847_v5 }
  0x2f   :  { %116 = vmatmul.f32.gmra.mxu3 %v849_v6  ;;  %157 = vmatmul.f32.gmra.mxu1 %v851_v7 }
  0x31   :  { %184 = vmatmul.f32.gmra.mxu2 %v854_v8 }
  0x36   :  { %95 = vmatmul.f32.gmra.mxu0 %v859_v9 }
  0x37   :  { %119 = vmatmul.f32.gmra.mxu3 %v861_v10  ;;  %160 = vmatmul.f32.gmra.mxu1 %v863_v11 }
  0x39   :  { %187 = vmatmul.f32.gmra.mxu2 %v866_v12 }
  0x3e   :  { %98 = vmatmul.f32.gmra.mxu0 %v871_v13 }
  0x3f   :  { %122 = vmatmul.f32.gmra.mxu3 %v873_v14  ;;  %163 = vmatmul.f32.gmra.mxu1 %v875_v15 }
  0x41   :  { %190 = vmatmul.f32.gmra.mxu2 %v878_v16 }
  0x46   :  { %101 = vmatmul.f32.gmra.mxu0 %v883_v17 }
  0x47   :  { %125 = vmatmul.f32.gmra.mxu3 %v885_v18  ;;  %166 = vmatmul.f32.gmra.mxu1 %v887_v19 }
  0x49   :  { %193 = vmatmul.f32.gmra.mxu2 %v890_v20 }
  0x4e   :  { %104 = vmatmul.f32.gmra.mxu0 %v895_v21 }
  0x4f   :  { %128 = vmatmul.f32.gmra.mxu3 %v897_v22  ;;  %169 = vmatmul.f32.gmra.mxu1 %v899_v23 }
  0x51   :  { %196 = vmatmul.f32.gmra.mxu2 %v902_v24 }
  0x56   :  { %107 = vmatmul.f32.gmra.mxu0 %v907_v25 }
  0x57   :  { %131 = vmatmul.f32.gmra.mxu3 %v909_v26  ;;  %172 = vmatmul.f32.gmra.mxu1 %v911_v27 }
  0x59   :  { %199 = vmatmul.f32.gmra.mxu2 %v914_v28 }
  0x5e   :  { %110 = vmatmul.f32.gmra.mxu0 %v919_v29 }
  0x5f   :  { %134 = vmatmul.f32.gmra.mxu3 %v921_v30  ;;  %175 = vmatmul.f32.gmra.mxu1 %v923_v31 }
  0x67   :  { %178 = vmatmul.f32.gmra.mxu1 %v928_v32 }
  0xa3   :  { %v90_v34 = vpop.f32.mrf.mxu0 }
  0xa4   :  { %v155_v35 = vpop.f32.mrf.mxu1 }
  0xa5   :  { %v156_v36 = vadd.f32 %v155_v35, %v90_v34 }
  0xa7   :  { %v203_v37 = vmul.f32 0.00390625, %v156_v36 }
  0xa9   :  { %248 = vperm.xlu0 %646, %v203_v37  }
  0xaa   :  { %v931_v38 = vpop.f32.mrf.mxu3 }
  0xab   :  { %v93_v39 = vpop.f32.mrf.mxu0 }
  0xac   :  { %v158_v40 = vpop.f32.mrf.mxu1  ;;  %v182_v41 = vpop.f32.mrf.mxu2 }
  0xad   :  { %v159_v42 = vadd.f32 %v158_v40, %v93_v39 }
  0xaf   :  { %v204_v43 = vmul.f32 0.00390625, %v159_v42 }
  0xb1   :  { %251 = vperm.xlu0 %646, %v204_v43  }
  0xb2   :  { %v117_v44 = vpop.f32.mrf.mxu3 }
  0xb3   :  { %v183_v45 = vadd.f32 %v182_v41, %v117_v44  ;;  %v96_v46 = vpop.f32.mrf.mxu0 }
  0xb4   :  { %v161_v47 = vpop.f32.mrf.mxu1  ;;  %v185_v48 = vpop.f32.mrf.mxu2 }
  0xb5   :  { %v212_v49 = vmul.f32 0.00390625, %v183_v45  ;;  %v162_v50 = vadd.f32 %v161_v47, %v96_v46 }
  0xb7   :  { %v205_v51 = vmul.f32 0.00390625, %v162_v50  ;;  %275 = vperm.xlu1 %647, %v212_v49  }
  0xb9   :  { %254 = vperm.xlu2 %648, %v205_v51  }
  0xba   :  { %v120_v52 = vpop.f32.mrf.mxu3 }
  0xbb   :  { %v186_v53 = vadd.f32 %v185_v48, %v120_v52  ;;  %v99_v54 = vpop.f32.mrf.mxu0 }
  0xbc   :  { %v164_v55 = vpop.f32.mrf.mxu1  ;;  %v188_v56 = vpop.f32.mrf.mxu2 }
  0xbd   :  { %v213_v57 = vmul.f32 0.00390625, %v186_v53  ;;  %v165_v58 = vadd.f32 %v164_v55, %v99_v54 }
  0xbf   :  { %v206_v59 = vmul.f32 0.00390625, %v165_v58 }
  0xc1   :  { %278 = vperm.xlu2 %648, %v213_v57   ;;  %257 = vperm.xlu0 %646, %v206_v59  }
  0xc2   :  { %v123_v60 = vpop.f32.mrf.mxu3 }
  0xc3   :  { %v189_v61 = vadd.f32 %v188_v56, %v123_v60  ;;  %v102_v62 = vpop.f32.mrf.mxu0 }
  0xc4   :  { %v167_v63 = vpop.f32.mrf.mxu1  ;;  %v191_v0 = vpop.f32.mrf.mxu2 }
  0xc5   :  { %v214_v33 = vmul.f32 0.00390625, %v189_v61  ;;  %v168_v34 = vadd.f32 %v167_v63, %v102_v62 }
  0xc7   :  { %v207_v35 = vmul.f32 0.00390625, %v168_v34  ;;  %281 = vperm.xlu1 %647, %v214_v33  }
  0xc9   :  { %260 = vperm.xlu2 %648, %v207_v35   ;;  %v226_v35 = vld [vmem:[%s1019_s1 + $0x38] sm:$0xff] }
  0xca   :  { %v126_v36 = vpop.f32.mrf.mxu3  ;;  %354 = vmatpush.msrb.mxu2 %v226_v35 }
  0xcb   :  { %v192_v37 = vadd.f32 %v191_v0, %v126_v36  ;;  %v105_v39 = vpop.f32.mrf.mxu0  ;;  %v225_v36 = vld [vmem:[%s1019_s1 + $0x30] sm:$0xff] }
  0xcc   :  { %v170_v40 = vpop.f32.mrf.mxu1  ;;  %v194_v41 = vpop.f32.mrf.mxu2  ;;  %355 = vmatpush.msrb.mxu2 %v225_v36 }
  0xcd   :  { %v215_v42 = vmul.f32 0.00390625, %v192_v37  ;;  %v171_v43 = vadd.f32 %v170_v40, %v105_v39  ;;  %v223_v37 = vld [vmem:[%s1019_s1 + $0x20] sm:$0xff]  ;;  %v222_v39 = vld [vmem:[%s1019_s1 + $0x18] sm:$0xff]  ;;  %v221_v40 = vld [vmem:[%s1019_s1 + $0x10] sm:$0xff] }
  0xcf   :  { %v208_v44 = vmul.f32 0.00390625, %v171_v43  ;;  %284 = vperm.xlu0 %646, %v215_v42   ;;  %v220_v42 = vld [vmem:[%s1019_s1 + $0x8] sm:$0xff] }
  0xd1   :  { %263 = vperm.xlu1 %647, %v208_v44  }
  0xd2   :  { %v129_v45 = vpop.f32.mrf.mxu3 }
  0xd3   :  { %v195_v46 = vadd.f32 %v194_v41, %v129_v45  ;;  %v108_v47 = vpop.f32.mrf.mxu0  ;;  %v219_v45 = vld [vmem:[%s1019_s1] sm:$0xff] }
  0xd4   :  { %v173_v48 = vpop.f32.mrf.mxu1  ;;  %v197_v51 = vpop.f32.mrf.mxu2 }
  0xd5   :  { %v216_v49 = vmul.f32 0.00390625, %v195_v46  ;;  %v174_v50 = vadd.f32 %v173_v48, %v108_v47 }
  0xd7   :  { %v209_v52 = vmul.f32 0.00390625, %v174_v50  ;;  %287 = vperm.xlu2 %648, %v216_v49   ;;  %v371_v49 = vld [vmem:[%s1021_s3] sm:$0xf] }
  0xd8   :  { %605 = vmatpush.msk.msrb.mxu3 %vm380_vm0, %v371_v49 }
  0xd9   :  { %266 = vperm.xlu0 %646, %v209_v52  }
  0xda   :  { %v132_v53 = vpop.f32.mrf.mxu3 }
  0xdb   :  { %v111_v54 = vpop.f32.mrf.mxu0  ;;  %v198_v33 = vadd.f32 %v197_v51, %v132_v53  ;;  %v295_v51 = vlaneseq }
  0xdc   :  { %v176_v55 = vpop.f32.mrf.mxu1  ;;  %v200_v58 = vpop.f32.mrf.mxu2 }
  0xdd   :  { %v177_v56 = vadd.f32 %v176_v55, %v111_v54  ;;  %v217_v34 = vmul.f32 0.00390625, %v198_v33  ;;  %v296_v53 = vand.u32 127, %v295_v51 }
  0xdf   :  { %v210_v57 = vmul.f32 0.00390625, %v177_v56  ;;  %v298_v55 = vadd.s32 4294967288, %v296_v53 }
  0xe1   :  { %269 = vperm.xlu2 %648, %v210_v57  }
  0xe2   :  { %v135_v59 = vpop.f32.mrf.mxu3 }
  0xe3   :  { %v201_v60 = vadd.f32 %v200_v58, %v135_v59  ;;  %v306_v58 = vadd.s32 4294967272, %v296_v53  ;;  %v302_v59 = vadd.s32 4294967280, %v296_v53 }
  0xe4   :  { %v179_v61 = vpop.f32.mrf.mxu1 }
  0xe5   :  { %v218_v62 = vmul.f32 0.00390625, %v201_v60  ;;  %v180_v63 = vadd.f32 %v179_v61, %v931_v38  ;;  %v224_v38 = vld [vmem:[%s1019_s1 + $0x28] sm:$0xff] }
  0xe6   :  { %356 = vmatpush.msrb.mxu2 %v224_v38  ;;  %v318_v38 = vadd.s32 4294967248, %v296_v53 }
  0xe7   :  { %v211_v0 = vmul.f32 0.00390625, %v180_v63  ;;  %293 = vperm.xlu0 %646, %v218_v62   ;;  %v310_v62 = vadd.s32 4294967264, %v296_v53 }
  0xe8   :  { %357 = vmatpush.msrb.mxu2 %v223_v37 }
  0xe9   :  { %272 = vperm.xlu1 %647, %v211_v0  }
  0xea   :  { %358 = vmatpush.msrb.mxu2 %v222_v39 }
  0xec   :  { %359 = vmatpush.msrb.mxu2 %v221_v40  ;;  %v314_v40 = vadd.s32 4294967256, %v296_v53 }
  0xee   :  { %360 = vmatpush.msrb.mxu2 %v220_v42 }
  0xf0   :  { %361 = vmatpush.msrb.mxu2 %v219_v45 }
  0xf1   :  { %290 = vperm.xlu1 %647, %v217_v34  }
 0x113   :  { %v255_v43 = vpop.permute.xlu2 %254 }
 0x114   :  { %v303_v35 = vperm.slane %v255_v43, %v302_v59 }
 0x11b   :  { %v249_v41 = vpop.permute.xlu0 %248  ;;  %v279_v47 = vpop.permute.xlu2 %278 }
 0x11c   :  { %v297_v61 = vperm.slane %v249_v41, %v296_v53  ;;  %v329_v39 = vperm.slane %v279_v47, %v302_v59 }
 0x123   :  { %v252_v46 = vpop.permute.xlu0 %251  ;;  %v261_v52 = vpop.permute.xlu2 %260 }
 0x124   :  { %v299_v57 = vperm.slane %v252_v46, %v298_v55 }
 0x126   :  { %v301_v0 = vsel %vm300_vm1, %v299_v57, %v297_v61 }
 0x127   :  { %v305_v42 = vsel %vm304_vm2, %v303_v35, %v301_v0 }
 0x129   :  { %v276_v44 = vpop.permute.xlu1 %275 }
 0x12a   :  { %v327_v36 = vperm.slane %v276_v44, %v298_v55  ;;  %v322_v55 = vadd.s32 4294967240, %v296_v53 }
 0x131   :  { %v288_v60 = vpop.permute.xlu2 %287 }
 0x133   :  { %v258_v50 = vpop.permute.xlu0 %257 }
 0x134   :  { %v307_v33 = vperm.slane %v258_v50, %v306_v58  ;;  %v311_v50 = vperm.slane %v261_v52, %v310_v62 }
 0x136   :  { %v309_v46 = vsel %vm308_vm3, %v307_v33, %v305_v42 }
 0x137   :  { %v313_v59 = vsel %vm312_vm4, %v311_v50, %v309_v46 }
 0x139   :  { %v282_v48 = vpop.permute.xlu1 %281 }
 0x13a   :  { %v331_v45 = vperm.slane %v282_v48, %v306_v58  ;;  %v335_v58 = vperm.slane %v288_v60, %v314_v40  ;;  %v666_v60 = vld [vmem:[%s1020_s2] ss:$0 sm:$0xff] }
 0x13b   :  { %v270_v47 = vpop.permute.xlu2 %269 }
 0x141   :  { %v285_v54 = vpop.permute.xlu0 %284 }
 0x142   :  { %v333_v61 = vperm.slane %v285_v54, %v310_v62 }
 0x143   :  { %v264_v56 = vpop.permute.xlu1 %263 }
 0x144   :  { %v315_v49 = vperm.slane %v264_v56, %v314_v40  ;;  %v323_v56 = vperm.slane %v270_v47, %v322_v55 }
 0x14b   :  { %v267_v63 = vpop.permute.xlu0 %266 }
 0x14c   :  { %v319_v43 = vperm.slane %v267_v63, %v318_v38 }
 0x159   :  { %v294_v0 = vpop.permute.xlu0 %293 }
 0x15b   :  { %v273_v34 = vpop.permute.xlu1 %272 }
 0x15c   :  { %v326_v37 = vperm.slane %v273_v34, %v296_v53  ;;  %v317_v34 = vsel %vm316_vm5, %v315_v49, %v313_v59 }
 0x15d   :  { %v321_v33 = vsel %vm320_vm6, %v319_v43, %v317_v34 }
 0x15e   :  { %v328_v41 = vsel %vm300_vm1, %v327_v36, %v326_v37  ;;  %v339_v37 = vperm.slane %v294_v0, %v322_v55  ;;  %v325_v53 = vsel %vm324_vm7, %v323_v56, %v321_v33 }
 0x15f   :  { %v330_v57 = vsel %vm304_vm2, %v329_v39, %v328_v41  ;;  %v425_v41 = vshrl.u32 %v295_v51, 7 }
 0x160   :  { %v332_v44 = vsel %vm308_vm3, %v331_v45, %v330_v57  ;;  %v667_v57 = vld [vmem:[%s1022_s4] ss:$0 sm:$0xff]  ;;  %s729_s4 = smov [#allocation6]  }
 0x161   :  { %v334_v48 = vsel %vm312_vm4, %v333_v61, %v332_v44  ;;  %649 = vset.pattern.permute.xlu1 %v425_v41  ;;  %v438_v46 = vadd.s32 16, %v425_v41  ;;  %v432_v49 = vadd.s32 8, %v425_v41 }
 0x162   :  { %v336_v52 = vsel %vm316_vm5, %v335_v58, %v334_v48 }
 0x163   :  { %v291_v35 = vpop.permute.xlu1 %290  ;;  %651 = vset.pattern.permute.xlu0 %v438_v46  ;;  %650 = vset.pattern.permute.xlu2 %v432_v49 }
 0x164   :  { %v337_v36 = vperm.slane %v291_v35, %v318_v38  ;;  %v368_v38 = vstv %s1023_s5  ;;  %s589_s5 = sshll.u32 %s729_s4, 4  ;;  %s590_s5 = int_to_ptr.vmem [resolvable:$true] %s589_s5 }
 0x166   :  { %v338_v54 = vsel %vm320_vm6, %v337_v36, %v336_v52  ;;  %v450_v52 = vadd.s32 32, %v425_v41 }
 0x167   :  { %v340_v62 = vsel %vm324_vm7, %v339_v37, %v338_v54  ;;  %v468_v37 = vadd.s32 56, %v425_v41  ;;  %v444_v54 = vadd.s32 24, %v425_v41 }
 0x168   :  { %v342_v63 = vsel %vm341_vm8, %v340_v62, %v325_v53  ;;  %v462_v53 = vadd.s32 48, %v425_v41  ;;  %v456_v62 = vadd.s32 40, %v425_v41 }
 0x169   :  { %604 = vmatmul.msk.f32.vlgmr.msrb.gmra.mxu2 %vm343_vm9, %v342_v63 }
 0x1ec   :  { %v363_v39 = vpop.f32.mrf.mxu2 }
 0x1ed   :  { %v364_v40 = vadd.f32 %v666_v60, %v363_v39 }
 0x1ef   :  { %vm367_vm10 = vcmp.gt.f32.partialorder %v364_v40, 0.0  ;;  %v369_v42 = vmul.f32 %v368_v38, %v364_v40 }
 0x1f1   :  { %v370_v45 = vsel %vm367_vm10, %v364_v40, %v369_v42 }
 0x1f2   :  { %606 = vmatmul.msk.f32.vlgmr.msrb.gmra.mxu3 %vm376_vm11, %v370_v45 }
 0x275   :  { %v401_v50 = vpop.f32.mrf.mxu3 }
 0x276   :  { %v402_v61 = vadd.f32 %v667_v57, %v401_v50 }
 0x278   :  { %v607_v43 = vmul.f32 -1.442695, %v402_v61 }
 0x27a   :  { %668 = vpow2.f32 %v607_v43 }
 0x280   :  { %v669_v44 = vpop.eup %668 }
 0x281   :  { %v407_v55 = vadd.f32 1.0, %v669_v44 }
 0x283   :  { %670 = vrcp.f32 %v407_v55  ;;  %v419_v51 = vand.u32 2147483648, %v407_v55  ;;  %v417_v58 = vand.u32 2147483647, %v407_v55  ;;  %vm413_vm13 = vweird.f32 %v407_v55 }
 0x285   :  { %v420_v35 = vor.u32 1.1754944e-38, %v419_v51  ;;  %vm418_vm15 = vcmp.eq.f32.partialorder %v417_v58, 8.507059e+37 }
 0x289   :  { %v671_v47 = vpop.eup %670 }
 0x28a   :  { %v409_v59 = vmul.f32 %v671_v47, %v407_v55  ;;  %vm414_vm12 = vweird.f32 %v671_v47 }
 0x28b   :  { %vm415_vm14 = vmor %vm413_vm13, %vm414_vm12 }
 0x28c   :  { %v410_v0 = vsub.f32 1.0, %v409_v59 }
 0x28e   :  { %v411_v48 = vmul.f32 %v671_v47, %v410_v0 }
 0x290   :  { %v412_v34 = vadd.f32 %v671_v47, %v411_v48 }
 0x292   :  { %v416_v33 = vsel %vm415_vm14, %v671_v47, %v412_v34 }
 0x293   :  { %v421_v36 = vsel %vm418_vm15, %v420_v35, %v416_v33 }
 0x294   :  { %v423_v56 = vperm.slane %v421_v36, 0  ;;  %v472_v63 = vperm.slane %v421_v36, 1 }
 0x296   :  { %440 = vperm.xlu0 %651, %v423_v56   ;;  %434 = vperm.xlu2 %650, %v423_v56  }
 0x297   :  { %428 = vperm.xlu1 %649, %v423_v56  }
 0x29e   :  { %656 = vset.pattern.permute.xlu0 %v468_v37  ;;  %653 = vset.pattern.permute.xlu2 %v450_v52 }
 0x29f   :  { %652 = vset.pattern.permute.xlu1 %v444_v54 }
 0x2a6   :  { %470 = vperm.xlu0 %656, %v423_v56   ;;  %452 = vperm.xlu2 %653, %v423_v56  }
 0x2a7   :  { %446 = vperm.xlu1 %652, %v423_v56  }
 0x2ae   :  { %661 = vset.pattern.permute.xlu0 %v450_v52  ;;  %655 = vset.pattern.permute.xlu2 %v462_v53 }
 0x2af   :  { %654 = vset.pattern.permute.xlu1 %v456_v62 }
 0x2b6   :  { %501 = vperm.xlu0 %661, %v472_v63   ;;  %464 = vperm.xlu2 %655, %v423_v56  }
 0x2b7   :  { %458 = vperm.xlu1 %654, %v423_v56  }
 0x2be   :  { %658 = vset.pattern.permute.xlu2 %v432_v49  ;;  %665 = vset.pattern.permute.xlu0 %v468_v37 }
 0x2bf   :  { %657 = vset.pattern.permute.xlu1 %v425_v41 }
 0x2c6   :  { %483 = vperm.xlu2 %658, %v472_v63  }
 0x2c7   :  { %477 = vperm.xlu1 %657, %v472_v63  }
 0x2ce   :  { %660 = vset.pattern.permute.xlu2 %v444_v54 }
 0x2cf   :  { %659 = vset.pattern.permute.xlu1 %v438_v46 }
 0x2d6   :  { %495 = vperm.xlu2 %660, %v472_v63  }
 0x2d7   :  { %489 = vperm.xlu1 %659, %v472_v63  }
 0x2de   :  { %663 = vset.pattern.permute.xlu2 %v462_v53 }
 0x2df   :  { %662 = vset.pattern.permute.xlu1 %v456_v62 }
 0x2e6   :  { %513 = vperm.xlu2 %663, %v472_v63  }
 0x2e7   :  { %507 = vperm.xlu1 %662, %v472_v63  }
 0x2ef   :  { %664 = vset.pattern.permute.xlu1 %v468_v37 }
 0x2f0   :  { %v435_v60 = vpop.permute.xlu2 %434 }
 0x2f1   :  { %v523_v39 = vmul.f32 %v435_v60, %v847_v5  ;;  %v524_v38 = vmul.f32 %v435_v60, %v851_v7 }
 0x2f3   :  { %555 = vst [vmem:[#allocation6 + $0x10] sm:$0xff] %v523_v39 }
 0x2f4   :  { %556 = vst [vmem:[#allocation6 + $0x18] sm:$0xff] %v524_v38 }
 0x2f7   :  { %519 = vperm.xlu1 %664, %v472_v63  }
 0x300   :  { %v453_v40 = vpop.permute.xlu2 %452 }
 0x301   :  { %v529_v42 = vmul.f32 %v453_v40, %v883_v17  ;;  %v530_v45 = vmul.f32 %v453_v40, %v887_v19 }
 0x303   :  { %561 = vst [vmem:[#allocation6 + $0x40] sm:$0xff] %v529_v42 }
 0x304   :  { %562 = vst [vmem:[#allocation6 + $0x48] sm:$0xff] %v530_v45 }
 0x308   :  { %v441_v41 = vpop.permute.xlu0 %440 }
 0x309   :  { %v525_v46 = vmul.f32 %v441_v41, %v859_v9  ;;  %v526_v49 = vmul.f32 %v441_v41, %v863_v11  ;;  %v429_v57 = vpop.permute.xlu1 %428 }
 0x30a   :  { %v521_v5 = vmul.f32 %v429_v57, %v829_v1  ;;  %v522_v7 = vmul.f32 %v429_v57, %v834_v3 }
 0x30b   :  { %557 = vst [vmem:[#allocation6 + $0x20] sm:$0xff] %v525_v46 }
 0x30c   :  { %558 = vst [vmem:[#allocation6 + $0x28] sm:$0xff] %v526_v49 }
 0x30d   :  { %553 = vst [vmem:[#allocation6] sm:$0xff] %v521_v5 }
 0x30e   :  { %554 = vst [vmem:[#allocation6 + $0x8] sm:$0xff] %v522_v7 }
 0x310   :  { %v465_v50 = vpop.permute.xlu2 %464 }
 0x311   :  { %v533_v17 = vmul.f32 %v465_v50, %v907_v25  ;;  %v534_v19 = vmul.f32 %v465_v50, %v911_v27 }
 0x313   :  { %565 = vst [vmem:[#allocation6 + $0x60] sm:$0xff] %v533_v17 }
 0x314   :  { %566 = vst [vmem:[#allocation6 + $0x68] sm:$0xff] %v534_v19 }
 0x318   :  { %v471_v61 = vpop.permute.xlu0 %470 }
 0x319   :  { %v535_v9 = vmul.f32 %v471_v61, %v919_v29  ;;  %v536_v11 = vmul.f32 %v471_v61, %v923_v31  ;;  %v447_v43 = vpop.permute.xlu1 %446 }
 0x31a   :  { %v527_v1 = vmul.f32 %v447_v43, %v871_v13  ;;  %v528_v3 = vmul.f32 %v447_v43, %v875_v15 }
 0x31b   :  { %567 = vst [vmem:[#allocation6 + $0x70] sm:$0xff] %v535_v9 }
 0x31c   :  { %568 = vst [vmem:[#allocation6 + $0x78] sm:$0xff] %v536_v11 }
 0x31d   :  { %559 = vst [vmem:[#allocation6 + $0x30] sm:$0xff] %v527_v1 }
 0x31e   :  { %560 = vst [vmem:[#allocation6 + $0x38] sm:$0xff] %v528_v3 }
 0x320   :  { %v484_v44 = vpop.permute.xlu2 %483 }
 0x321   :  { %v539_v25 = vmul.f32 %v484_v44, %v849_v6  ;;  %v540_v27 = vmul.f32 %v484_v44, %v841_v4 }
 0x323   :  { %571 = vst [vmem:[#allocation6 + $0x90] sm:$0xff] %v539_v25 }
 0x324   :  { %572 = vst [vmem:[#allocation6 + $0x98] sm:$0xff] %v540_v27 }
 0x328   :  { %v502_v55 = vpop.permute.xlu0 %501 }
 0x329   :  { %v545_v29 = vmul.f32 %v502_v55, %v885_v18  ;;  %v546_v31 = vmul.f32 %v502_v55, %v878_v16  ;;  %v459_v47 = vpop.permute.xlu1 %458 }
 0x32a   :  { %v531_v13 = vmul.f32 %v459_v47, %v895_v21  ;;  %v532_v15 = vmul.f32 %v459_v47, %v899_v23 }
 0x32b   :  { %577 = vst [vmem:[#allocation6 + $0xc0] sm:$0xff] %v545_v29 }
 0x32c   :  { %578 = vst [vmem:[#allocation6 + $0xc8] sm:$0xff] %v546_v31 }
 0x32d   :  { %563 = vst [vmem:[#allocation6 + $0x50] sm:$0xff] %v531_v13 }
 0x32e   :  { %564 = vst [vmem:[#allocation6 + $0x58] sm:$0xff] %v532_v15 }
 0x330   :  { %v496_v59 = vpop.permute.xlu2 %495 }
 0x331   :  { %v543_v6 = vmul.f32 %v496_v59, %v873_v14  ;;  %v544_v4 = vmul.f32 %v496_v59, %v866_v12 }
 0x333   :  { %575 = vst [vmem:[#allocation6 + $0xb0] sm:$0xff] %v543_v6 }
 0x334   :  { %576 = vst [vmem:[#allocation6 + $0xb8] sm:$0xff] %v544_v4 }
 0x339   :  { %v478_v0 = vpop.permute.xlu1 %477 }
 0x33a   :  { %v537_v18 = vmul.f32 %v478_v0, %v832_v2  ;;  %v538_v16 = vmul.f32 %v478_v0, %v928_v32 }
 0x33c   :  { %569 = vst [vmem:[#allocation6 + $0x80] sm:$0xff] %v537_v18 }
 0x33d   :  { %570 = vst [vmem:[#allocation6 + $0x88] sm:$0xff] %v538_v16 }
 0x340   :  { %v514_v21 = vpop.permute.xlu2 %513 }
 0x341   :  { %v549_v23 = vmul.f32 %v514_v21, %v909_v26  ;;  %v550_v51 = vmul.f32 %v514_v21, %v902_v24 }
 0x343   :  { %581 = vst [vmem:[#allocation6 + $0xe0] sm:$0xff] %v549_v23 }
 0x344   :  { %582 = vst [vmem:[#allocation6 + $0xe8] sm:$0xff] %v550_v51 }
 0x349   :  { %v490_v48 = vpop.permute.xlu1 %489 }
 0x34a   :  { %v541_v14 = vmul.f32 %v490_v48, %v861_v10  ;;  %v542_v12 = vmul.f32 %v490_v48, %v854_v8 }
 0x34c   :  { %573 = vst [vmem:[#allocation6 + $0xa0] sm:$0xff] %v541_v14 }
 0x34d   :  { %574 = vst [vmem:[#allocation6 + $0xa8] sm:$0xff] %v542_v12 }
 0x359   :  { %v508_v58 = vpop.permute.xlu1 %507 }
 0x35a   :  { %v547_v2 = vmul.f32 %v508_v58, %v897_v22  ;;  %v548_v32 = vmul.f32 %v508_v58, %v890_v20 }
 0x35c   :  { %579 = vst [vmem:[#allocation6 + $0xd0] sm:$0xff] %v547_v2 }
 0x35d   :  { %580 = vst [vmem:[#allocation6 + $0xd8] sm:$0xff] %v548_v32 }
 0x369   :  { %v520_v24 = vpop.permute.xlu1 %519 }
 0x36a   :  { %v551_v10 = vmul.f32 %v520_v24, %v921_v30  ;;  %v552_v8 = vmul.f32 %v520_v24, %v914_v28 }
 0x36c   :  { %583 = vst [vmem:[#allocation6 + $0xf0] sm:$0xff] %v551_v10 }
 0x36d   :  { %584 = vst [vmem:[#allocation6 + $0xf8] sm:$0xff] %v552_v8 }
 0x36e   :  { %597 = dma.vmem_to_hbm [thread:$0]  %s590_s5, 4096, %s592_s0, [#allocation5], %s725_s26, %s725_s26, %s726_s27  }
 0x36f   :  { %722 = dma.done.wait [#allocation5], 4096  }
 0x370   :  { %723 = vsyncadd [#allocation5], 4294963200 }
 0x371   :  { %602 = vsyncpa [#allocation4], 1 }
 0x372   :  { %603 = vsyncpa [#allocation5], 1 }

</bundles_post_ra>
